<compile_context>
chip_gen: v7x
topology: tpu7x:2x2x1
jax: 0.10.0
libtpu: 0.0.40
codegen_flags: <defaults>
</compile_context>

<pallas_src>
import jax
import jax.numpy as jnp
from jax.experimental import pallas as pl
from jax.experimental.pallas import tpu as pltpu


def _round_up(x, m):
    return ((x + m - 1) // m) * m


def _device_vmem_bytes():
    """Best-effort device VMEM capacity query with a conservative fallback."""
    try:
        info = pltpu.get_tpu_info()
        cap = getattr(info, "vmem_capacity_bytes", None)
        if cap:
            return int(cap)
    except Exception:
        pass
    return 64 << 20  # v7x per-TensorCore VMEM (most restrictive target)


def _head_kernel(x_ref, w1_ref, b1_ref, w2_ref, b2_ref, w3_ref, b3_ref, o_ref):
    # x tile arrives in bf16 (halved HBM traffic); upcast once for the f32
    # residual path.  Bias add, relu and residual stay in f32.
    x_bf = x_ref[...]
    x = x_bf.astype(jnp.float32)

    b1 = b1_ref[...]
    b2 = b2_ref[...]
    b3 = b3_ref[...]

    # linear1 + relu + residual   (bf16 MXU operands, f32 accumulate)
    h1 = jnp.dot(x_bf, w1_ref[...], preferred_element_type=jnp.float32) + b1
    h1 = jnp.maximum(h1, 0.0) + x

    # linear2 + relu + residual
    h2 = jnp.dot(h1.astype(jnp.bfloat16), w2_ref[...],
                 preferred_element_type=jnp.float32) + b2
    h2 = jnp.maximum(h2, 0.0) + h1

    # linear3
    out = jnp.dot(h2.astype(jnp.bfloat16), w3_ref[...],
                  preferred_element_type=jnp.float32) + b3
    o_ref[...] = out.astype(o_ref.dtype)


def _pick_tm(M, tm):
    if tm is not None:
        if tm <= 0 or tm % 8 != 0:
            raise ValueError("tm must be a positive multiple of 8")
        return min(tm, _round_up(M, 8))
    if M <= 8:
        return 8
    if M <= 512:
        # At least 2 grid steps so both v7x TensorCores get work under
        # dimension_semantics=("parallel",); stay sublane (8) aligned.
        return _round_up(pl.cdiv(M, 2), 8)
    # Large M: bigger row tiles amortize per-step overhead (~0.35us) and
    # bias reloads; keep well inside the per-generation VMEM budget.
    return 256


def flatten_head_t_pallas(x, params, *, tm=None):
    """x: (bs, n_vars, d_model, patch_num) -> (bs, n_vars, target_window)."""
    w1, b1, w2, b2, w3, b3 = params
    bs, n_vars, d_model, patch_num = x.shape
    nf = d_model * patch_num
    assert w1.shape == (nf, nf) and w2.shape == (nf, nf) and w3.shape[0] == nf
    tw = w3.shape[1]
    M = bs * n_vars

    tm = _pick_tm(M, tm)
    n_tiles = pl.cdiv(M, tm)           # partial edge tile handled by Pallas
    tw_pad = _round_up(tw, 128)        # lane-dense output slab

    # Activations streamed in bf16 (the only per-tile pipelined HBM traffic);
    # no padding copy: edge-tile garbage rows are sliced off below.
    x2d = x.reshape(M, nf).astype(jnp.bfloat16)

    # Weights pre-transposed to (in, out); bf16 for the MXU.
    w1b = w1.astype(jnp.bfloat16)
    w2b = w2.astype(jnp.bfloat16)
    w3b = jnp.pad(w3, ((0, 0), (0, tw_pad - tw))).astype(jnp.bfloat16)

    # Biases as f32 rows (broadcast inside the kernel).
    b1r = b1.astype(jnp.float32).reshape(1, nf)
    b2r = b2.astype(jnp.float32).reshape(1, nf)
    b3r = jnp.pad(b3.astype(jnp.float32), ((0, tw_pad - tw),)).reshape(1, tw_pad)

    out_dtype = x.dtype
    out_isz = jnp.dtype(out_dtype).itemsize
    x_isz = 2  # bf16 activations

    # VMEM budget: resident weights/biases are single-copy (whole-array VMEM
    # operands are not pipelined), x/out tiles double-buffered, plus the f32
    # intermediates and slack.
    resident = (w1b.size + w2b.size + w3b.size) * 2 \
        + (b1r.size + b2r.size + b3r.size) * 4
    pipelined = 2 * tm * nf * x_isz + 2 * tm * tw_pad * out_isz
    intermediates = tm * (2 * nf + tw_pad) * 4
    vmem_need = resident + pipelined + intermediates + (4 << 20)
    cap = _device_vmem_bytes()
    vmem_limit = int(min(max(vmem_need, 16 << 20), cap - (4 << 20)))
    # TODO(synk): for nf >~ 2.5-3K (v7x, 64 MiB/TC) or ~2x that on v5e/v6e the
    # resident nf x nf weights no longer fit VMEM -- switch to a K/N-tiled
    # weight grid with an f32 accumulator scratch instead of whole-weight
    # residency.

    rows_compute = n_tiles * tm
    flops = 2 * rows_compute * (2 * nf * nf + nf * tw_pad)
    bytes_accessed = (M * nf * x_isz
                      + M * tw_pad * out_isz
                      + (w1b.size + w2b.size + w3b.size) * 2
                      + (b1r.size + b2r.size + b3r.size) * 4)

    out = pl.pallas_call(
        _head_kernel,
        out_shape=jax.ShapeDtypeStruct((M, tw_pad), out_dtype),
        grid_spec=pltpu.PrefetchScalarGridSpec(
            num_scalar_prefetch=0,
            grid=(n_tiles,),
            in_specs=[
                pl.BlockSpec((tm, nf), lambda i: (i, 0)),            # x tile (pipelined, bf16)
                pl.BlockSpec(memory_space=pltpu.MemorySpace.VMEM),   # W1^T (resident, single copy)
                pl.BlockSpec(memory_space=pltpu.MemorySpace.VMEM),   # b1
                pl.BlockSpec(memory_space=pltpu.MemorySpace.VMEM),   # W2^T
                pl.BlockSpec(memory_space=pltpu.MemorySpace.VMEM),   # b2
                pl.BlockSpec(memory_space=pltpu.MemorySpace.VMEM),   # W3^T (padded)
                pl.BlockSpec(memory_space=pltpu.MemorySpace.VMEM),   # b3  (padded)
            ],
            out_specs=pl.BlockSpec((tm, tw_pad), lambda i: (i, 0)),  # lane-dense
        ),
        compiler_params=pltpu.CompilerParams(
            dimension_semantics=("parallel",),      # megacore-shardable row axis
            vmem_limit_bytes=vmem_limit,
        ),
        cost_estimate=pl.CostEstimate(
            flops=flops, transcendentals=0, bytes_accessed=bytes_accessed),
    )(x2d, w1b, b1r, w2b, b2r, w3b, b3r)

    return out[:M, :tw].reshape(bs, n_vars, tw)


def init_params(key, nf, target_window, dtype=jnp.float32):
    """Deterministic init matching nn.Linear shapes (weights stored transposed: (in, out))."""
    ks = jax.random.split(key, 6)

    def lin(kw, kb, fan_in, fan_out):
        bound = 1.0 / (fan_in ** 0.5)
        w = jax.random.uniform(kw, (fan_in, fan_out), dtype, -bound, bound)
        b = jax.random.uniform(kb, (fan_out,), dtype, -bound, bound)
        return w, b

    w1, b1 = lin(ks[0], ks[1], nf, nf)
    w2, b2 = lin(ks[2], ks[3], nf, nf)
    w3, b3 = lin(ks[4], ks[5], nf, target_window)
    return (w1, b1, w2, b2, w3, b3)


def flatten_head_t_ref(x, params):
    """Pure-JAX f32 reference mirroring the PyTorch forward."""
    w1, b1, w2, b2, w3, b3 = params
    bs, n_vars, d_model, patch_num = x.shape
    h = x.reshape(bs, n_vars, d_model * patch_num).astype(jnp.float32)
    h = jnp.maximum(h @ w1 + b1, 0.0) + h
    h = jnp.maximum(h @ w2 + b2, 0.0) + h
    return h @ w3 + b3


def flatten_head_t_ref_bf16(x, params):
    """Reference with the kernel's numerics: bf16 activation stream and matmul
    operands, f32 accumulate / bias / relu / residual."""
    w1, b1, w2, b2, w3, b3 = params
    bs, n_vars, d_model, patch_num = x.shape

    def mm(a, w):
        return jnp.dot(a.astype(jnp.bfloat16), w.astype(jnp.bfloat16),
                       preferred_element_type=jnp.float32)

    h = x.reshape(bs, n_vars, d_model * patch_num)
    h = h.astype(jnp.bfloat16).astype(jnp.float32)   # x streamed in bf16
    h = jnp.maximum(mm(h, w1) + b1, 0.0) + h
    h = jnp.maximum(mm(h, w2) + b2, 0.0) + h
    return mm(h, w3) + b3


if __name__ == "__main__":
    # Small shapes consistent with the module.
    bs, n_vars, d_model, patch_num = 2, 4, 16, 8
    nf = d_model * patch_num          # 128
    target_window = 96
    # head_dropout exists in __init__ but is never applied in forward.

    key = jax.random.PRNGKey(0)
    kx, kp = jax.random.split(key)
    x = jax.random.normal(kx, (bs, n_vars, d_model, patch_num), jnp.float32)
    params = init_params(kp, nf, target_window)

    out = flatten_head_t_pallas(x, params)
    out = jax.block_until_ready(out)
    assert out.shape == (bs, n_vars, target_window)

    # Tight check vs a reference with identical numerics (bf16 stream/ops, f32 acc).
    ref_lo = flatten_head_t_ref_bf16(x, params)
    assert jnp.allclose(out, ref_lo, atol=2e-3, rtol=2e-3), "mismatch vs bf16-matmul reference"

    # Loose sanity check vs the full-f32 PyTorch-equivalent reference
    # (bf16 MXU operands / bf16 activation stream introduce a small bounded error).
    ref_f32 = flatten_head_t_ref(x, params)
    assert float(jnp.max(jnp.abs(out - ref_f32))) < 0.2, "mismatch vs f32 reference"

    print("KERNEL_OK")
</pallas_src>

<mosaic_0001>
module attributes {stable_mosaic.version = 11 : i64} {
  func.func @_head_kernel(%arg0: i32, %arg1: memref<8x128xbf16, #tpu.memory_space<vmem>>, %arg2: memref<128x128xbf16, #tpu.memory_space<vmem>>, %arg3: memref<1x128xf32, #tpu.memory_space<vmem>>, %arg4: memref<128x128xbf16, #tpu.memory_space<vmem>>, %arg5: memref<1x128xf32, #tpu.memory_space<vmem>>, %arg6: memref<128x128xbf16, #tpu.memory_space<vmem>>, %arg7: memref<1x128xf32, #tpu.memory_space<vmem>>, %arg8: memref<8x128xf32, #tpu.memory_space<vmem>>) attributes {dimension_semantics = [#tpu.dimension_semantics<parallel>], iteration_bounds = array<i64: 1>, scalar_prefetch = 0 : i64, scratch_operands = 0 : i64, tpu.core_type = #tpu.core_type<tc>, window_params = [{transform_indices = @transform_0, window_bounds = array<i64: 8, 128>}, {pipeline_mode = #tpu.pipeline_mode<synchronous>, transform_indices = @transform_1, window_bounds = array<i64: 128, 128>}, {pipeline_mode = #tpu.pipeline_mode<synchronous>, transform_indices = @transform_2, window_bounds = array<i64: 1, 128>}, {pipeline_mode = #tpu.pipeline_mode<synchronous>, transform_indices = @transform_3, window_bounds = array<i64: 128, 128>}, {pipeline_mode = #tpu.pipeline_mode<synchronous>, transform_indices = @transform_4, window_bounds = array<i64: 1, 128>}, {pipeline_mode = #tpu.pipeline_mode<synchronous>, transform_indices = @transform_5, window_bounds = array<i64: 128, 128>}, {pipeline_mode = #tpu.pipeline_mode<synchronous>, transform_indices = @transform_6, window_bounds = array<i64: 1, 128>}, {transform_indices = @transform_7, window_bounds = array<i64: 8, 128>}]} {
    %c0 = arith.constant 0 : index
    %c0_0 = arith.constant 0 : index
    %0 = vector.load %arg1[%c0, %c0_0] : memref<8x128xbf16, #tpu.memory_space<vmem>>, vector<8x128xbf16>
    %1 = arith.extf %0 : vector<8x128xbf16> to vector<8x128xf32>
    %c0_1 = arith.constant 0 : index
    %c0_2 = arith.constant 0 : index
    %2 = vector.load %arg3[%c0_1, %c0_2] : memref<1x128xf32, #tpu.memory_space<vmem>>, vector<1x128xf32>
    %c0_3 = arith.constant 0 : index
    %c0_4 = arith.constant 0 : index
    %3 = vector.load %arg5[%c0_3, %c0_4] : memref<1x128xf32, #tpu.memory_space<vmem>>, vector<1x128xf32>
    %c0_5 = arith.constant 0 : index
    %c0_6 = arith.constant 0 : index
    %4 = vector.load %arg7[%c0_5, %c0_6] : memref<1x128xf32, #tpu.memory_space<vmem>>, vector<1x128xf32>
    %c0_7 = arith.constant 0 : index
    %c0_8 = arith.constant 0 : index
    %5 = vector.load %arg2[%c0_7, %c0_8] : memref<128x128xbf16, #tpu.memory_space<vmem>>, vector<128x128xbf16>
    %cst = arith.constant dense<0.000000e+00> : vector<8x128xf32>
    %6 = tpu.matmul %0, %5, %cst {dimension_numbers = #tpu.dot_dimension_numbers<[1], [0], [0], [1], [0, 0, 1, 1], [], []>} : vector<8x128xbf16>, vector<128x128xbf16>, vector<8x128xf32> -> vector<8x128xf32>
    %7 = vector.broadcast %2 : vector<1x128xf32> to vector<8x128xf32>
    %8 = arith.addf %6, %7 : vector<8x128xf32>
    %cst_9 = arith.constant 0.000000e+00 : f32
    %9 = vector.broadcast %cst_9 : f32 to vector<8x128xf32>
    %10 = arith.maximumf %8, %9 : vector<8x128xf32>
    %11 = arith.addf %10, %1 : vector<8x128xf32>
    %12 = arith.truncf %11 : vector<8x128xf32> to vector<8x128xbf16>
    %c0_10 = arith.constant 0 : index
    %c0_11 = arith.constant 0 : index
    %13 = vector.load %arg4[%c0_10, %c0_11] : memref<128x128xbf16, #tpu.memory_space<vmem>>, vector<128x128xbf16>
    %cst_12 = arith.constant dense<0.000000e+00> : vector<8x128xf32>
    %14 = tpu.matmul %12, %13, %cst_12 {dimension_numbers = #tpu.dot_dimension_numbers<[1], [0], [0], [1], [0, 0, 1, 1], [], []>} : vector<8x128xbf16>, vector<128x128xbf16>, vector<8x128xf32> -> vector<8x128xf32>
    %15 = vector.broadcast %3 : vector<1x128xf32> to vector<8x128xf32>
    %16 = arith.addf %14, %15 : vector<8x128xf32>
    %cst_13 = arith.constant 0.000000e+00 : f32
    %17 = vector.broadcast %cst_13 : f32 to vector<8x128xf32>
    %18 = arith.maximumf %16, %17 : vector<8x128xf32>
    %19 = arith.addf %18, %11 : vector<8x128xf32>
    %20 = arith.truncf %19 : vector<8x128xf32> to vector<8x128xbf16>
    %c0_14 = arith.constant 0 : index
    %c0_15 = arith.constant 0 : index
    %21 = vector.load %arg6[%c0_14, %c0_15] : memref<128x128xbf16, #tpu.memory_space<vmem>>, vector<128x128xbf16>
    %cst_16 = arith.constant dense<0.000000e+00> : vector<8x128xf32>
    %22 = tpu.matmul %20, %21, %cst_16 {dimension_numbers = #tpu.dot_dimension_numbers<[1], [0], [0], [1], [0, 0, 1, 1], [], []>} : vector<8x128xbf16>, vector<128x128xbf16>, vector<8x128xf32> -> vector<8x128xf32>
    %23 = vector.broadcast %4 : vector<1x128xf32> to vector<8x128xf32>
    %24 = arith.addf %22, %23 : vector<8x128xf32>
    %c0_17 = arith.constant 0 : index
    %c0_18 = arith.constant 0 : index
    %25 = vector.load %arg8[%c0_17, %c0_18] : memref<8x128xf32, #tpu.memory_space<vmem>>, vector<8x128xf32>
    tpu.vector_store %arg8[%c0_17, %c0_18], %24 {strides = array<i32>} : memref<8x128xf32, #tpu.memory_space<vmem>>, vector<8x128xf32>,
    return
  }
  func.func @transform_0(%arg0: i32) -> (i32, i32) {
    %c0_i32 = arith.constant 0 : i32
    %c0_i32_0 = arith.constant 0 : i32
    return %arg0, %c0_i32 : i32, i32
  }
  func.func @transform_1(%arg0: i32) -> (i32, i32) {
    %c0_i32 = arith.constant 0 : i32
    %c0_i32_0 = arith.constant 0 : i32
    %c0_i32_1 = arith.constant 0 : i32
    return %c0_i32, %c0_i32_0 : i32, i32
  }
  func.func @transform_2(%arg0: i32) -> (i32, i32) {
    %c0_i32 = arith.constant 0 : i32
    %c0_i32_0 = arith.constant 0 : i32
    %c0_i32_1 = arith.constant 0 : i32
    return %c0_i32, %c0_i32_0 : i32, i32
  }
  func.func @transform_3(%arg0: i32) -> (i32, i32) {
    %c0_i32 = arith.constant 0 : i32
    %c0_i32_0 = arith.constant 0 : i32
    %c0_i32_1 = arith.constant 0 : i32
    return %c0_i32, %c0_i32_0 : i32, i32
  }
  func.func @transform_4(%arg0: i32) -> (i32, i32) {
    %c0_i32 = arith.constant 0 : i32
    %c0_i32_0 = arith.constant 0 : i32
    %c0_i32_1 = arith.constant 0 : i32
    return %c0_i32, %c0_i32_0 : i32, i32
  }
  func.func @transform_5(%arg0: i32) -> (i32, i32) {
    %c0_i32 = arith.constant 0 : i32
    %c0_i32_0 = arith.constant 0 : i32
    %c0_i32_1 = arith.constant 0 : i32
    return %c0_i32, %c0_i32_0 : i32, i32
  }
  func.func @transform_6(%arg0: i32) -> (i32, i32) {
    %c0_i32 = arith.constant 0 : i32
    %c0_i32_0 = arith.constant 0 : i32
    %c0_i32_1 = arith.constant 0 : i32
    return %c0_i32, %c0_i32_0 : i32, i32
  }
  func.func @transform_7(%arg0: i32) -> (i32, i32) {
    %c0_i32 = arith.constant 0 : i32
    %c0_i32_0 = arith.constant 0 : i32
    return %arg0, %c0_i32 : i32, i32
  }
}

</mosaic_0001>

<bundles_post_ra>
// kernel: tpu_custom_call.1
= control target key start
LH: loop header
LB: loop body
LE: loop exit
PB: predicated region body
PF: predicated region fallthrough
CT: control target
= control target key end

     0   :  { %12 = vsyncpa [#allocation3], 0  ;;  %s862_s0 = inlined_call_operand.hbm [shape: bf16[8,128], index: 0, kind: input, shape index: {}]   ;;  %s863_s1 = inlined_call_operand.hbm [shape: bf16[128,128], index: 1, kind: input, shape index: {}]   ;;  %s864_s2 = inlined_call_operand.vmem [shape: f32[1,128], index: 2, kind: input, shape index: {}]   ;;  %s865_s3 = inlined_call_operand.hbm [shape: bf16[128,128], index: 3, kind: input, shape index: {}]   ;;  %s866_s4 = inlined_call_operand.vmem [shape: f32[1,128], index: 4, kind: input, shape index: {}]   ;;  %s867_s5 = inlined_call_operand.hbm [shape: bf16[128,128], index: 5, kind: input, shape index: {}]   ;;  %s868_s6 = inlined_call_operand.vmem [shape: f32[1,128], index: 6, kind: input, shape index: {}]   ;;  %s869_s7 = inlined_call_operand.hbm [shape: f32[8,128], index: 7, kind: output, shape index: {}]  }
   0x1   :  { %13 = vsyncpa [#allocation6], 0 }
   0x2   :  { %14 = vsyncpa [#allocation9], 0 }
   0x3   :  { %15 = vsyncpa [#allocation4], 0  ;;  %s705_s24 = smov [#allocation5]   ;;  %s587_s28 = scalar_lea.hbm %s863_s1, 1024 }
   0x4   :  { %s31_s25 = sshll.u32 %s705_s24, 4  ;;  %p588_p0 = scmp.ne.s32.totalorder %s863_s1, %s587_s28  ;;  %s32_s25 = int_to_ptr.vmem [resolvable:$true] %s31_s25 }
   0x5   :  { %p591_p1 = scmp.lt.u32.totalorder %s587_s28, %s863_s1 }
   0x7   :  { %p593_p2 = pnand %p591_p1, %p588_p0 }
   0x9   :  { %596 = shalt.err (!%p593_p2)
}
   0xa   :  { %s597_s10 = scalar_lea.vmem %s32_s25, 1024  ;;  %p602_p4 = scmp.lt.s32.totalorder %s32_s25, %s32_s25 }
   0xb   :  { %p598_p3 = scmp.ne.s32.totalorder %s32_s25, %s597_s10  ;;  %p603_p5 = scmp.lt.s32.totalorder %s597_s10, %s597_s10 }
   0xd   :  { %p604_p6 = por %p603_p5, %p602_p4 }
   0xf   :  { %p605_p7 = pnand %p604_p6, %p598_p3 }
  0x11   :  { %608 = shalt.err (!%p605_p7)
}
  0x12   :  { %s706_s11 = smov 64   ;;  %s707_s12 = smov 4  }
  0x13   :  { %37 = dma.hbm_to_vmem [thread:$0]  %s863_s1, 1024, %s32_s25, [#allocation6], %s706_s11, %s706_s11, %s707_s12  }
  0x14   :  { %s708_s15 = smov [#allocation2]   ;;  %s709_s17 = smov [#allocation7]  }
  0x15   :  { %s22_s16 = sshll.u32 %s708_s15, 4  ;;  %s45_s18 = sshll.u32 %s709_s17, 4  ;;  %s23_s16 = int_to_ptr.vmem [resolvable:$true] %s22_s16  ;;  %s46_s18 = int_to_ptr.vmem [resolvable:$true] %s45_s18 }
  0x16   :  { %s609_s21 = scalar_lea.hbm %s862_s0, 64 }
  0x17   :  { %p610_p8 = scmp.ne.s32.totalorder %s862_s0, %s609_s21  ;;  %p613_p9 = scmp.lt.u32.totalorder %s609_s21, %s862_s0 }
  0x19   :  { %p615_p10 = pnand %p613_p9, %p610_p8 }
  0x1b   :  { %618 = shalt.err (!%p615_p10)
}
  0x1c   :  { %s619_s1 = scalar_lea.vmem %s23_s16, 64  ;;  %p624_p12 = scmp.lt.s32.totalorder %s23_s16, %s23_s16 }
  0x1d   :  { %p620_p11 = scmp.ne.s32.totalorder %s23_s16, %s619_s1  ;;  %p625_p13 = scmp.lt.s32.totalorder %s619_s1, %s619_s1 }
  0x1f   :  { %p626_p0 = por %p625_p13, %p624_p12 }
  0x21   :  { %p627_p1 = pnand %p626_p0, %p620_p11 }
  0x23   :  { %630 = shalt.err (!%p627_p1)
}
  0x24   :  { %25 = dma.hbm_to_vmem [thread:$0]  %s862_s0, 64, %s23_s16, [#allocation3]  }
  0x25   :  { %s631_s30 = scalar_lea.hbm %s865_s3, 1024 }
  0x26   :  { %p632_p2 = scmp.ne.s32.totalorder %s865_s3, %s631_s30  ;;  %p635_p3 = scmp.lt.u32.totalorder %s631_s30, %s865_s3 }
  0x28   :  { %p637_p4 = pnand %p635_p3, %p632_p2 }
  0x2a   :  { %640 = shalt.err (!%p637_p4)
}
  0x2b   :  { %s641_s14 = scalar_lea.vmem %s46_s18, 1024  ;;  %p646_p6 = scmp.lt.s32.totalorder %s46_s18, %s46_s18 }
  0x2c   :  { %p642_p5 = scmp.ne.s32.totalorder %s46_s18, %s641_s14  ;;  %p647_p7 = scmp.lt.s32.totalorder %s641_s14, %s641_s14 }
  0x2e   :  { %p648_p8 = por %p647_p7, %p646_p6 }
  0x30   :  { %p649_p9 = pnand %p648_p8, %p642_p5 }
  0x32   :  { %652 = shalt.err (!%p649_p9)
}
  0x33   :  { %51 = dma.hbm_to_vmem [thread:$0]  %s865_s3, 1024, %s46_s18, [#allocation6], %s706_s11, %s706_s11, %s707_s12  }
  0x34   :  { %s710_s16 = smov [#allocation8]   ;;  %s653_s21 = scalar_lea.hbm %s867_s5, 1024 }
  0x35   :  { %s59_s17 = sshll.u32 %s710_s16, 4  ;;  %p654_p10 = scmp.ne.s32.totalorder %s867_s5, %s653_s21  ;;  %s60_s17 = int_to_ptr.vmem [resolvable:$true] %s59_s17 }
  0x36   :  { %p657_p11 = scmp.lt.u32.totalorder %s653_s21, %s867_s5 }
  0x38   :  { %p659_p12 = pnand %p657_p11, %p654_p10 }
  0x3a   :  { %662 = shalt.err (!%p659_p12)
}
  0x3b   :  { %s663_s1 = scalar_lea.vmem %s60_s17, 1024  ;;  %p668_p0 = scmp.lt.s32.totalorder %s60_s17, %s60_s17 }
  0x3c   :  { %p664_p13 = scmp.ne.s32.totalorder %s60_s17, %s663_s1  ;;  %p669_p1 = scmp.lt.s32.totalorder %s663_s1, %s663_s1 }
  0x3e   :  { %p670_p2 = por %p669_p1, %p668_p0 }
  0x40   :  { %p671_p3 = pnand %p670_p2, %p664_p13 }
  0x42   :  { %674 = shalt.err (!%p671_p3)
}
  0x43   :  { %65 = dma.hbm_to_vmem [thread:$0]  %s867_s5, 1024, %s60_s17, [#allocation9], %s706_s11, %s706_s11, %s707_s12  }
  0x44   :  { %697 = dma.done.wait [#allocation3], 64  }
  0x45   :  { %698 = vsyncadd [#allocation3], 4294967232 }
  0x46   :  { %699 = dma.done.wait [#allocation6], 2048  }
  0x47   :  { %700 = vsyncadd [#allocation6], 4294965248 }
  0x48   :  { %701 = dma.done.wait [#allocation9], 1024  }
  0x49   :  { %702 = vsyncadd [#allocation9], 4294966272  ;;  %v711_v0 = vmov 0.0   ;;  %vm712_vm0 = vmmov 0   ;;  %v563_v1 = vld [vmem:[#allocation5] sm:$0xff]   ;;  %v564_v2 = vld [vmem:[#allocation5 + $0x8] sm:$0xff]  }
  0x4a   :  { %494 = vmatprep.subr.bf16.mxu0 %v711_v0  ;;  %510 = vmatprep.mubr.msk.bf16.mxu0 %vm712_vm0, %v711_v0  ;;  %v565_v3 = vld [vmem:[#allocation5 + $0x10] sm:$0xff]   ;;  %v571_v4 = vld [vmem:[#allocation7] sm:$0xff]   ;;  %v566_v5 = vld [vmem:[#allocation5 + $0x18] sm:$0xff]   ;;  %s713_s28 = smov [#allocation10]  }
  0x4b   :  { %514 = vmatprep.subr.bf16.mxu1 %v711_v0  ;;  %530 = vmatprep.mubr.msk.bf16.mxu1 %vm712_vm0, %v711_v0  ;;  %v572_v6 = vld [vmem:[#allocation7 + $0x8] sm:$0xff]   ;;  %v567_v7 = vld [vmem:[#allocation5 + $0x20] sm:$0xff]   ;;  %v573_v8 = vld [vmem:[#allocation7 + $0x10] sm:$0xff]   ;;  %s429_s29 = sshll.u32 %s713_s28, 4  ;;  %s430_s29 = int_to_ptr.vmem [resolvable:$true] %s429_s29 }
  0x4c   :  { %495 = vmatpush3.bf16.msra.mxu0 %v563_v1  ;;  %515 = vmatpush3.bf16.msra.mxu1 %v571_v4  ;;  %v568_v9 = vld [vmem:[#allocation5 + $0x28] sm:$0xff]   ;;  %v574_v10 = vld [vmem:[#allocation7 + $0x18] sm:$0xff]   ;;  %v569_v11 = vld [vmem:[#allocation5 + $0x30] sm:$0xff]   ;;  %p680_p5 = scmp.lt.s32.totalorder %s430_s29, %s430_s29 }
  0x4d   :  { %496 = vmatprep.subr.bf16.mxu0 %v711_v0  ;;  %516 = vmatprep.subr.bf16.mxu1 %v711_v0  ;;  %v575_v12 = vld [vmem:[#allocation7 + $0x20] sm:$0xff]   ;;  %v570_v13 = vld [vmem:[#allocation5 + $0x38] sm:$0xff]   ;;  %v576_v14 = vld [vmem:[#allocation7 + $0x28] sm:$0xff]  }
  0x4e   :  { %v81_v15 = vld [vmem:[#allocation2] sm:$0xf]  ;;  %v577_v16 = vld [vmem:[#allocation7 + $0x30] sm:$0xff]   ;;  %v579_v18 = vld [vmem:[#allocation8] sm:$0xff]  }
  0x4f   :  { %v578_v17 = vld [vmem:[#allocation7 + $0x38] sm:$0xff]   ;;  %v580_v19 = vld [vmem:[#allocation8 + $0x8] sm:$0xff]   ;;  %v581_v20 = vld [vmem:[#allocation8 + $0x10] sm:$0xff]   ;;  %v82_v26 = vunpack.c.l.bf16 %v81_v15 }
  0x50   :  { %497 = vmatpush3.bf16.msra.mxu0 %v564_v2  ;;  %517 = vmatpush3.bf16.msra.mxu1 %v572_v6  ;;  %v582_v21 = vld [vmem:[#allocation8 + $0x18] sm:$0xff]   ;;  %v583_v22 = vld [vmem:[#allocation8 + $0x20] sm:$0xff]   ;;  %v584_v23 = vld [vmem:[#allocation8 + $0x28] sm:$0xff]  }
  0x51   :  { %498 = vmatprep.subr.bf16.mxu0 %v711_v0  ;;  %518 = vmatprep.subr.bf16.mxu1 %v711_v0  ;;  %v440_v24 = vld [vmem:[%s864_s2] ss:$0 sm:$0xff]  ;;  %v585_v34 = vld [vmem:[#allocation8 + $0x30] sm:$0xff]  }
  0x52   :  { %v586_v35 = vld [vmem:[#allocation8 + $0x38] sm:$0xff]  }
  0x53   :  { %v449_v36 = vld [vmem:[%s866_s4] ss:$0 sm:$0xff]  ;;  %s675_s4 = scalar_lea.vmem %s430_s29, 128 }
  0x54   :  { %499 = vmatpush3.bf16.msra.mxu0 %v565_v3  ;;  %519 = vmatpush3.bf16.msra.mxu1 %v573_v8  ;;  %v458_v45 = vld [vmem:[%s868_s6] ss:$0 sm:$0xff]  ;;  %p676_p4 = scmp.ne.s32.totalorder %s430_s29, %s675_s4  ;;  %p681_p6 = scmp.lt.s32.totalorder %s675_s4, %s675_s4 }
  0x55   :  { %500 = vmatprep.subr.bf16.mxu0 %v711_v0  ;;  %520 = vmatprep.subr.bf16.mxu1 %v711_v0 }
  0x56   :  { %p682_p7 = por %p681_p6, %p680_p5 }
  0x58   :  { %501 = vmatpush3.bf16.msra.mxu0 %v566_v5  ;;  %521 = vmatpush3.bf16.msra.mxu1 %v574_v10  ;;  %p683_p8 = pnand %p682_p7, %p676_p4 }
  0x59   :  { %502 = vmatprep.subr.bf16.mxu0 %v711_v0  ;;  %522 = vmatprep.subr.bf16.mxu1 %v711_v0 }
  0x5c   :  { %503 = vmatpush3.bf16.msra.mxu0 %v567_v7  ;;  %523 = vmatpush3.bf16.msra.mxu1 %v575_v12 }
  0x5d   :  { %504 = vmatprep.subr.bf16.mxu0 %v711_v0  ;;  %524 = vmatprep.subr.bf16.mxu1 %v711_v0 }
  0x60   :  { %505 = vmatpush3.bf16.msra.mxu0 %v568_v9  ;;  %525 = vmatpush3.bf16.msra.mxu1 %v576_v14 }
  0x61   :  { %506 = vmatprep.subr.bf16.mxu0 %v711_v0  ;;  %526 = vmatprep.subr.bf16.mxu1 %v711_v0 }
  0x64   :  { %507 = vmatpush3.bf16.msra.mxu0 %v569_v11  ;;  %527 = vmatpush3.bf16.msra.mxu1 %v577_v16 }
  0x65   :  { %508 = vmatprep.subr.bf16.mxu0 %v711_v0  ;;  %528 = vmatprep.subr.bf16.mxu1 %v711_v0 }
  0x68   :  { %509 = vmatpush3.bf16.msra.mxu0 %v570_v13  ;;  %529 = vmatpush3.bf16.msra.mxu1 %v578_v17 }
  0x69   :  { %534 = vmatprep.subr.bf16.mxu0 %v711_v0 }
  0x6b   :  { %511 = vmatmul.mubr.bf16.vlgmr.msra.gmra.mrb[0].mxu0 %v81_v15 }
  0x6c   :  { %550 = vmatprep.mubr.msk.bf16.mxu0 %vm712_vm0, %v711_v0  ;;  %535 = vmatpush3.bf16.msra.mxu0 %v579_v18 }
  0x6d   :  { %536 = vmatprep.subr.bf16.mxu0 %v711_v0 }
  0x70   :  { %537 = vmatpush3.bf16.msra.mxu0 %v580_v19 }
  0x71   :  { %538 = vmatprep.subr.bf16.mxu0 %v711_v0 }
  0x74   :  { %539 = vmatpush3.bf16.msra.mxu0 %v581_v20 }
  0x75   :  { %540 = vmatprep.subr.bf16.mxu0 %v711_v0 }
  0x78   :  { %541 = vmatpush3.bf16.msra.mxu0 %v582_v21 }
  0x79   :  { %542 = vmatprep.subr.bf16.mxu0 %v711_v0 }
  0x7c   :  { %543 = vmatpush3.bf16.msra.mxu0 %v583_v22 }
  0x7d   :  { %544 = vmatprep.subr.bf16.mxu0 %v711_v0 }
  0x80   :  { %545 = vmatpush3.bf16.msra.mxu0 %v584_v23 }
  0x81   :  { %546 = vmatprep.subr.bf16.mxu0 %v711_v0 }
  0x84   :  { %547 = vmatpush3.bf16.msra.mxu0 %v585_v34 }
  0x85   :  { %548 = vmatprep.subr.bf16.mxu0 %v711_v0 }
  0x88   :  { %549 = vmatpush3.bf16.msra.mxu0 %v586_v35 }
 0x13e   :  { %v190_v25 = vpop.f32.mrb[0].mxu0 }
 0x13f   :  { %v191_v27 = vadd.f32 %v440_v24, %v190_v25  ;;  %v512_v28 = vpop.f32.mrb[1].mxu0 }
 0x140   :  { %v193_v29 = vpop.f32.mrb[2].mxu0 }
 0x141   :  { %v196_v30 = vmax.f32 %v191_v27, 0.0  ;;  %v513_v31 = vpop.f32.mrb[3].mxu0 }
 0x143   :  { %v197_v32 = vadd.f32 %v196_v30, %v82_v26 }
 0x145   :  { %v198_v33 = vpack.c.bf16 %v197_v32, %v197_v32 }
 0x147   :  { %531 = vmatmul.mubr.bf16.vlgmr.msra.gmra.mrb[0].mxu1 %v198_v33 }
 0x21a   :  { %v303_v37 = vpop.f32.mrb[0].mxu1 }
 0x21b   :  { %v304_v38 = vadd.f32 %v449_v36, %v303_v37  ;;  %v532_v39 = vpop.f32.mrb[1].mxu1 }
 0x21c   :  { %v306_v40 = vpop.f32.mrb[2].mxu1 }
 0x21d   :  { %v309_v41 = vmax.f32 %v304_v38, 0.0  ;;  %v533_v42 = vpop.f32.mrb[3].mxu1 }
 0x21f   :  { %v310_v43 = vadd.f32 %v309_v41, %v197_v32 }
 0x221   :  { %v311_v44 = vpack.c.bf16 %v310_v43, %v310_v43 }
 0x223   :  { %551 = vmatmul.mubr.bf16.vlgmr.msra.gmra.mrb[4].mxu0 %v311_v44 }
 0x2f6   :  { %v416_v46 = vpop.f32.mrb[4].mxu0 }
 0x2f7   :  { %v417_v47 = vadd.f32 %v458_v45, %v416_v46  ;;  %v552_v48 = vpop.f32.mrb[5].mxu0 }
 0x2f8   :  { %v419_v49 = vpop.f32.mrb[6].mxu0 }
 0x2f9   :  { %422 = vst [vmem:[#allocation10] sm:$0xff] %v417_v47  ;;  %v553_v50 = vpop.f32.mrb[7].mxu0 }
 0x2fa   :  { %686 = shalt.err (!%p683_p8)
}
 0x2fb   :  { %s687_s6 = scalar_lea.hbm %s869_s7, 128 }
 0x2fc   :  { %p688_p9 = scmp.ne.s32.totalorder %s869_s7, %s687_s6  ;;  %p691_p10 = scmp.lt.u32.totalorder %s687_s6, %s869_s7 }
 0x2fe   :  { %p693_p11 = pnand %p691_p10, %p688_p9 }
 0x300   :  { %696 = shalt.err (!%p693_p11)
}
 0x301   :  { %432 = dma.vmem_to_hbm [thread:$0]  %s430_s29, 128, %s869_s7, [#allocation4]  }
 0x302   :  { %703 = dma.done.wait [#allocation4], 128  }
 0x303   :  { %704 = vsyncadd [#allocation4], 4294967168 }
 0x304   :  { %436 = vsyncpa [#allocation3], 1 }
 0x305   :  { %437 = vsyncpa [#allocation6], 1 }
 0x306   :  { %438 = vsyncpa [#allocation9], 1 }
 0x307   :  { %439 = vsyncpa [#allocation4], 1 }

</bundles_post_ra>
